<compile_context>
chip_gen: v5e
topology: v5e:2x2
jax: 0.10.0
libtpu: 0.0.40
codegen_flags: <defaults>
</compile_context>

<pallas_src>
import functools

import jax
import jax.numpy as jnp
from jax.experimental import pallas as pl
from jax.experimental.pallas import tpu as pltpu

_LANES = 128     # hidden dim padded to a full 128-lane vreg
_SEG = 16        # slab segment alignment (rows): covers f32 (8) and bf16 (16) tiles
_SPLIT_B = 256   # split into >=2 grid steps (v7x 2 TensorCores) once B >= this


def _round_up(v, m):
    return (v + m - 1) // m * m


# ----------------------------------------------------------------------------
# Pallas kernel: fused 3-layer MLP on one batch tile, params from a single slab
# ----------------------------------------------------------------------------
def _mlp_kernel(x_ref, p_ref, o_ref, *, f_eff, offs, num_out):
    w1_off, b1_off, w2_off, b2_off, w3_off, b3_off = offs
    H = _LANES
    x = x_ref[...]                                   # [TB, f_eff]
    # Static, 16-row-aligned slices into the resident parameter slab -> views.
    w1 = p_ref[w1_off:w1_off + f_eff, :]             # [f_eff, 128]
    b1 = p_ref[b1_off:b1_off + 1, :]                 # [1, 128]
    w2 = p_ref[w2_off:w2_off + H, :]                 # [128, 128]
    b2 = p_ref[b2_off:b2_off + 1, :]                 # [1, 128]
    w3 = p_ref[w3_off:w3_off + H, :]                 # [128, 128]
    b3 = p_ref[b3_off:b3_off + 1, :]                 # [1, 128]

    # All padding in the slab is exactly zero, so hidden lanes 64..127 stay 0
    # through the ReLUs and the K=128 padded contractions are exact.
    # (Contracting only the real 64 hidden rows would halve vmatmul pushes, but
    #  this kernel is overhead/HBM-bound, so K stays 128 — free MXU filler.)
    h = jnp.dot(x, w1, preferred_element_type=jnp.float32) + b1
    h = jnp.maximum(h, 0.0).astype(x.dtype)          # ReLU
    h = jnp.dot(h, w2, preferred_element_type=jnp.float32) + b2
    h = jnp.maximum(h, 0.0).astype(x.dtype)          # ReLU
    o = jnp.dot(h, w3, preferred_element_type=jnp.float32) + b3
    # Only the real classes hit HBM (narrow, contiguous writeback).
    o_ref[...] = o[:, :num_out].astype(o_ref.dtype)


def _choose_tiles(B, block_b):
    nb = pl.cdiv(B, block_b)
    if B >= _SPLIT_B:
        nb = max(nb, 2)                        # keep both v7x TensorCores busy
    tb = _round_up(pl.cdiv(B, nb), 8)          # balanced tiles -> minimal dead rows
    return nb, tb, nb * tb


def _mlp_pallas(x_flat, param_slab, *, f_eff, offs, num_classes, block_b=1024):
    """x_flat: [B, f_eff]; param_slab: [rows, 128]; returns [B, num_classes]."""
    B = x_flat.shape[0]
    nb, tb, b_pad = _choose_tiles(B, block_b)
    if b_pad != B:
        x_flat = jnp.pad(x_flat, ((0, b_pad - B), (0, 0)))
    rows = param_slab.shape[0]

    kernel = functools.partial(_mlp_kernel, f_eff=f_eff, offs=offs,
                               num_out=num_classes)

    itemsize_x = jnp.dtype(x_flat.dtype).itemsize
    itemsize_p = jnp.dtype(param_slab.dtype).itemsize
    flops = 2 * b_pad * (f_eff * _LANES + 2 * _LANES * _LANES)
    bytes_accessed = (itemsize_x * b_pad * f_eff          # x in
                      + 4 * b_pad * num_classes           # out (f32, dense)
                      + itemsize_p * rows * _LANES)       # resident params

    out = pl.pallas_call(
        kernel,
        out_shape=jax.ShapeDtypeStruct((b_pad, num_classes), jnp.float32),
        grid=(nb,),
        in_specs=[
            pl.BlockSpec((tb, f_eff), lambda i: (i, 0)),       # batch-tiled x
            pl.BlockSpec((rows, _LANES), lambda i: (0, 0)),    # resident params
        ],
        out_specs=pl.BlockSpec((tb, num_classes), lambda i: (i, 0)),
        compiler_params=pltpu.CompilerParams(
            dimension_semantics=("parallel",)),
        cost_estimate=pl.CostEstimate(
            flops=flops, transcendentals=0, bytes_accessed=bytes_accessed),
    )(x_flat, param_slab)

    return out if b_pad == B else out[:B]


# ----------------------------------------------------------------------------
# Wrapper reproducing ElementClassifier.forward semantics
# ----------------------------------------------------------------------------
class ElementClassifierPallas:
    def __init__(self, key, in_features=20, hidden_size_linear=64,
                 hidden_layers=1, num_classes=32,
                 compute_dtype=jnp.float32, block_b=1024):
        # TODO(synk): num_classes in the original comes from an Excel sheet
        # (load_element_data) and weights may be torch.load'ed; both are file
        # I/O with no kernel equivalent, so we use deterministic Xavier init.
        assert hidden_layers == 1            # matches default module construction
        assert hidden_size_linear <= _LANES and num_classes <= _LANES
        self.in_features = in_features
        self.hidden = hidden_size_linear
        self.num_classes = num_classes
        # bf16 halves HBM-facing x/param bytes on v6e/v7x (f32 acc kept inside
        # each dot); keep f32 default for reference-level accuracy and v5e.
        self.compute_dtype = compute_dtype
        self.block_b = block_b

        def xavier_normal(k, fan_in, fan_out):
            std = jnp.sqrt(2.0 / (fan_in + fan_out))
            # stored as [in, out] (transposed vs. torch's [out, in])
            return std * jax.random.normal(k, (fan_in, fan_out), jnp.float32)

        k1, k2, k3 = jax.random.split(key, 3)
        self.w1 = xavier_normal(k1, in_features, hidden_size_linear)
        self.b1 = jnp.full((1, hidden_size_linear), 0.01, jnp.float32)
        self.w2 = xavier_normal(k2, hidden_size_linear, hidden_size_linear)
        self.b2 = jnp.full((1, hidden_size_linear), 0.01, jnp.float32)
        self.w3 = xavier_normal(k3, hidden_size_linear, num_classes)
        self.b3 = jnp.full((1, num_classes), 0.01, jnp.float32)

        # Pack all parameters into one 128-lane slab (single resident DMA).
        # Every segment starts on a 16-row boundary so the kernel's static
        # slices are tile-aligned views. All padding is exactly zero — the
        # K=128 padded contractions rely on padded bias/weight lanes being 0.
        H = _LANES

        def pad_to(a, rows_, cols):
            return jnp.pad(a, ((0, rows_ - a.shape[0]), (0, cols - a.shape[1])))

        w1_rows = _round_up(in_features, _SEG)
        w1_off = 0
        b1_off = w1_off + w1_rows
        w2_off = b1_off + _SEG
        b2_off = w2_off + H
        w3_off = b2_off + _SEG
        b3_off = w3_off + H
        rows_total = b3_off + _SEG
        self.slab_offsets = (w1_off, b1_off, w2_off, b2_off, w3_off, b3_off)

        self.param_slab = jnp.concatenate([
            pad_to(self.w1, w1_rows, H),
            pad_to(self.b1, _SEG, H),
            pad_to(self.w2, H, H),
            pad_to(self.b2, _SEG, H),
            pad_to(self.w3, H, H),
            pad_to(self.b3, _SEG, H),
        ], axis=0).astype(compute_dtype)
        assert self.param_slab.shape == (rows_total, H)

    def __call__(self, x):
        # x: [B, n, 2]
        if x.ndim != 3 or x.shape[2] != 2:
            raise ValueError("input must have shape (batch_size, n, 2)")
        max_num_measurements = self.in_features // 2
        n = x.shape[1]
        if n > max_num_measurements:
            x = x[:, :max_num_measurements]          # truncate (warns in torch)
            n = max_num_measurements
        # No zero-pad of x along features: the kernel uses only the first 2*n
        # rows of W1, mathematically identical to padding x with zeros.
        f_eff = 2 * n
        x_flat = x.reshape(x.shape[0], f_eff).astype(self.compute_dtype)
        return _mlp_pallas(x_flat, self.param_slab, f_eff=f_eff,
                           offs=self.slab_offsets,
                           num_classes=self.num_classes, block_b=self.block_b)


# Pure-JAX reference for verification (original padded-x formulation)
def _reference(model, x):
    max_num = model.in_features // 2
    n = x.shape[1]
    if n > max_num:
        x = x[:, :max_num]
    elif n < max_num:
        x = jnp.pad(x, ((0, 0), (0, max_num - n), (0, 0)))
    h = x.reshape(x.shape[0], -1).astype(jnp.float32)
    h = jnp.maximum(h @ model.w1 + model.b1, 0.0)
    h = jnp.maximum(h @ model.w2 + model.b2, 0.0)
    return h @ model.w3 + model.b3


if __name__ == "__main__":
    key = jax.random.PRNGKey(0)
    k_param, k_x1, k_x2, k_x3 = jax.random.split(key, 4)

    model = ElementClassifierPallas(k_param, in_features=20,
                                    hidden_size_linear=64,
                                    hidden_layers=1, num_classes=32)

    # Case 1: tiny batch, n=8 < max 10 -> exercises the "first 2n rows of W1"
    # path and the single-grid-step small-batch fast path.
    x_small = jax.random.normal(k_x1, (2, 8, 2), jnp.float32)
    out_small = jax.block_until_ready(model(x_small))
    ref_small = _reference(model, x_small)
    assert out_small.shape == (2, 32), out_small.shape
    assert jnp.allclose(out_small, ref_small, atol=1e-4, rtol=1e-4), \
        float(jnp.max(jnp.abs(out_small - ref_small)))

    # Case 2: B=300 -> 2 balanced grid steps (tb=152), 4 padded rows only.
    x_large = jax.random.normal(k_x2, (300, 10, 2), jnp.float32)
    out_large = jax.block_until_ready(model(x_large))
    ref_large = _reference(model, x_large)
    assert out_large.shape == (300, 32), out_large.shape
    assert jnp.allclose(out_large, ref_large, atol=1e-4, rtol=1e-4), \
        float(jnp.max(jnp.abs(out_large - ref_large)))

    # Case 3: B=512 -> 2 grid steps (tb=256), no wrapper pad and no output slice.
    x_even = jax.random.normal(k_x3, (512, 10, 2), jnp.float32)
    out_even = jax.block_until_ready(model(x_even))
    ref_even = _reference(model, x_even)
    assert out_even.shape == (512, 32), out_even.shape
    assert jnp.allclose(out_even, ref_even, atol=1e-4, rtol=1e-4), \
        float(jnp.max(jnp.abs(out_even - ref_even)))

    print("KERNEL_OK")
</pallas_src>

<mosaic_0001>
module attributes {stable_mosaic.version = 11 : i64} {
  func.func @_mlp_kernel(%arg0: i32, %arg1: memref<8x16xf32, #tpu.memory_space<vmem>>, %arg2: memref<336x128xf32, #tpu.memory_space<vmem>>, %arg3: memref<8x32xf32, #tpu.memory_space<vmem>>) attributes {dimension_semantics = [#tpu.dimension_semantics<parallel>], iteration_bounds = array<i64: 1>, scalar_prefetch = 0 : i64, scratch_operands = 0 : i64, tpu.core_type = #tpu.core_type<tc>, window_params = [{transform_indices = @transform_0, window_bounds = array<i64: 8, 16>}, {pipeline_mode = #tpu.pipeline_mode<synchronous>, transform_indices = @transform_1, window_bounds = array<i64: 336, 128>}, {transform_indices = @transform_2, window_bounds = array<i64: 8, 32>}]} {
    %c0 = arith.constant 0 : index
    %c0_0 = arith.constant 0 : index
    %0 = vector.load %arg1[%c0, %c0_0] : memref<8x16xf32, #tpu.memory_space<vmem>>, vector<8x16xf32>
    %c0_1 = arith.constant 0 : index
    %c0_2 = arith.constant 0 : index
    %1 = vector.load %arg2[%c0_1, %c0_2] : memref<336x128xf32, #tpu.memory_space<vmem>>, vector<16x128xf32>
    %c32 = arith.constant 32 : index
    %c0_3 = arith.constant 0 : index
    %2 = vector.load %arg2[%c32, %c0_3] : memref<336x128xf32, #tpu.memory_space<vmem>>, vector<1x128xf32>
    %c48 = arith.constant 48 : index
    %c0_4 = arith.constant 0 : index
    %3 = vector.load %arg2[%c48, %c0_4] : memref<336x128xf32, #tpu.memory_space<vmem>>, vector<128x128xf32>
    %c176 = arith.constant 176 : index
    %c0_5 = arith.constant 0 : index
    %4 = vector.load %arg2[%c176, %c0_5] : memref<336x128xf32, #tpu.memory_space<vmem>>, vector<1x128xf32>
    %c192 = arith.constant 192 : index
    %c0_6 = arith.constant 0 : index
    %5 = vector.load %arg2[%c192, %c0_6] : memref<336x128xf32, #tpu.memory_space<vmem>>, vector<128x128xf32>
    %c320 = arith.constant 320 : index
    %c0_7 = arith.constant 0 : index
    %6 = vector.load %arg2[%c320, %c0_7] : memref<336x128xf32, #tpu.memory_space<vmem>>, vector<1x128xf32>
    %cst = arith.constant dense<0.000000e+00> : vector<8x128xf32>
    %7 = tpu.matmul %0, %1, %cst {dimension_numbers = #tpu.dot_dimension_numbers<[1], [0], [0], [1], [0, 0, 1, 1], [], []>} : vector<8x16xf32>, vector<16x128xf32>, vector<8x128xf32> -> vector<8x128xf32>
    %8 = vector.broadcast %2 : vector<1x128xf32> to vector<8x128xf32>
    %9 = arith.addf %7, %8 : vector<8x128xf32>
    %cst_8 = arith.constant 0.000000e+00 : f32
    %10 = vector.broadcast %cst_8 : f32 to vector<8x128xf32>
    %11 = arith.maximumf %9, %10 : vector<8x128xf32>
    %cst_9 = arith.constant dense<0.000000e+00> : vector<8x128xf32>
    %12 = tpu.matmul %11, %3, %cst_9 {dimension_numbers = #tpu.dot_dimension_numbers<[1], [0], [0], [1], [0, 0, 1, 1], [], []>} : vector<8x128xf32>, vector<128x128xf32>, vector<8x128xf32> -> vector<8x128xf32>
    %13 = vector.broadcast %4 : vector<1x128xf32> to vector<8x128xf32>
    %14 = arith.addf %12, %13 : vector<8x128xf32>
    %cst_10 = arith.constant 0.000000e+00 : f32
    %15 = vector.broadcast %cst_10 : f32 to vector<8x128xf32>
    %16 = arith.maximumf %14, %15 : vector<8x128xf32>
    %cst_11 = arith.constant dense<0.000000e+00> : vector<8x128xf32>
    %17 = tpu.matmul %16, %5, %cst_11 {dimension_numbers = #tpu.dot_dimension_numbers<[1], [0], [0], [1], [0, 0, 1, 1], [], []>} : vector<8x128xf32>, vector<128x128xf32>, vector<8x128xf32> -> vector<8x128xf32>
    %18 = vector.broadcast %6 : vector<1x128xf32> to vector<8x128xf32>
    %19 = arith.addf %17, %18 : vector<8x128xf32>
    %20 = vector.extract_strided_slice %19 {offsets = [0, 0], sizes = [8, 32], strides = [1, 1]} : vector<8x128xf32> to vector<8x32xf32>
    %c0_12 = arith.constant 0 : index
    %c0_13 = arith.constant 0 : index
    %21 = vector.load %arg3[%c0_12, %c0_13] : memref<8x32xf32, #tpu.memory_space<vmem>>, vector<8x32xf32>
    tpu.vector_store %arg3[%c0_12, %c0_13], %20 {strides = array<i32>} : memref<8x32xf32, #tpu.memory_space<vmem>>, vector<8x32xf32>,
    return
  }
  func.func @transform_0(%arg0: i32) -> (i32, i32) {
    %c0_i32 = arith.constant 0 : i32
    %c0_i32_0 = arith.constant 0 : i32
    return %arg0, %c0_i32 : i32, i32
  }
  func.func @transform_1(%arg0: i32) -> (i32, i32) {
    %c0_i32 = arith.constant 0 : i32
    %c0_i32_0 = arith.constant 0 : i32
    %c0_i32_1 = arith.constant 0 : i32
    return %c0_i32, %c0_i32_0 : i32, i32
  }
  func.func @transform_2(%arg0: i32) -> (i32, i32) {
    %c0_i32 = arith.constant 0 : i32
    %c0_i32_0 = arith.constant 0 : i32
    return %arg0, %c0_i32 : i32, i32
  }
}

</mosaic_0001>

<bundles_post_ra>
// kernel: tpu_custom_call.1
= control target key start
LH: loop header
LB: loop body
LE: loop exit
PB: predicated region body
PF: predicated region fallthrough
CT: control target
= control target key end

     0   :  { %7 = vsyncpa [#allocation3], 0  ;;  %s285_s0 = inlined_call_operand.hbm [shape: f32[8,16], index: 0, kind: input, shape index: {}]   ;;  %s286_s1 = inlined_call_operand.hbm [shape: f32[336,128], index: 1, kind: input, shape index: {}]   ;;  %s287_s2 = inlined_call_operand.hbm [shape: f32[8,32], index: 2, kind: output, shape index: {}]  }
   0x1   :  { %8 = vsyncpa [#allocation6], 0 }
   0x2   :  { %9 = vsyncpa [#allocation4], 0  ;;  %s15_s11 = sshll.u32 %s285_s0, 4  ;;  %s256_s12 = smov [#allocation2]   ;;  %s16_s11 = int_to_ptr.hbm [resolvable:$true] %s15_s11 }
   0x3   :  { %s17_s13 = sshll.u32 %s256_s12, 4  ;;  %s25_s16 = sshll.u32 %s286_s1, 4  ;;  %s18_s13 = int_to_ptr.vmem [resolvable:$true] %s17_s13  ;;  %s26_s16 = int_to_ptr.hbm [resolvable:$true] %s25_s16 }
   0x4   :  { %20 = dma.hbm_to_vmem [thread:$0]  %s16_s11, 128, %s18_s13, [#allocation3]  }
   0x5   :  { %s257_s17 = smov [#allocation5]   ;;  %s258_s19 = smov 128  }
   0x6   :  { %s27_s18 = sshll.u32 %s257_s17, 4  ;;  %s259_s20 = smov 8   ;;  %s28_s18 = int_to_ptr.vmem [resolvable:$true] %s27_s18 }
   0x7   :  { %33 = dma.hbm_to_vmem [thread:$0]  %s26_s16, 5376, %s28_s18, [#allocation6], %s258_s19, %s258_s19, %s259_s20  }
   0x8   :  { %250 = dma.done.wait [#allocation3], 128  }
   0x9   :  { %251 = vsyncadd [#allocation3], 4294967168 }
   0xa   :  { %252 = dma.done.wait [#allocation6], 5376  }
   0xb   :  { %253 = vsyncadd [#allocation6], 4294961920  ;;  %v44_v0 = vld [vmem:[#allocation5 + $0x8] sm:$0xff]  ;;  %v43_v1 = vld [vmem:[#allocation5] sm:$0xff]  ;;  %vm81_vm0 = vcmask 130048   ;;  %s260_s0 = smov [#allocation7]  }
   0xc   :  { %99 = vmatpush.msra.mxu0 %v44_v0  ;;  %v42_v2 = vld [vmem:[#allocation2] sm:$0xff]  ;;  %v61_v3 = vld [vmem:[#allocation5 + $0xa8] sm:$0xff]  ;;  %v60_v4 = vld [vmem:[#allocation5 + $0xa0] sm:$0xff]  ;;  %s156_s1 = sshll.u32 %s260_s0, 4  ;;  %s158_s23 = sshll.u32 %s287_s2, 4  ;;  %vm149_vm1 = vcmask 261120   ;;  %s157_s1 = int_to_ptr.vmem [resolvable:$true] %s156_s1  ;;  %s159_s23 = int_to_ptr.hbm [resolvable:$true] %s158_s23 }
   0xd   :  { %107 = vmatpush.msra.mxu1 %v61_v3  ;;  %v59_v5 = vld [vmem:[#allocation5 + $0x98] sm:$0xff]  ;;  %v58_v6 = vld [vmem:[#allocation5 + $0x90] sm:$0xff]  ;;  %v57_v7 = vld [vmem:[#allocation5 + $0x88] sm:$0xff] }
   0xe   :  { %100 = vmatpush.msra.mxu0 %v43_v1  ;;  %v56_v8 = vld [vmem:[#allocation5 + $0x80] sm:$0xff]  ;;  %v55_v9 = vld [vmem:[#allocation5 + $0x78] sm:$0xff]  ;;  %v54_v10 = vld [vmem:[#allocation5 + $0x70] sm:$0xff] }
   0xf   :  { %169 = vmatmul.msk.f32.vlgmr.msra.gmra.mxu0 %vm81_vm0, %v42_v2  ;;  %108 = vmatpush.msra.mxu1 %v60_v4  ;;  %v53_v11 = vld [vmem:[#allocation5 + $0x68] sm:$0xff]  ;;  %v52_v12 = vld [vmem:[#allocation5 + $0x60] sm:$0xff]  ;;  %v51_v13 = vld [vmem:[#allocation5 + $0x58] sm:$0xff] }
  0x10   :  { %v50_v14 = vld [vmem:[#allocation5 + $0x50] sm:$0xff]  ;;  %v49_v15 = vld [vmem:[#allocation5 + $0x48] sm:$0xff]  ;;  %v48_v16 = vld [vmem:[#allocation5 + $0x40] sm:$0xff] }
  0x11   :  { %109 = vmatpush.msra.mxu1 %v59_v5  ;;  %v47_v17 = vld [vmem:[#allocation5 + $0x38] sm:$0xff]  ;;  %v46_v18 = vld [vmem:[#allocation5 + $0x30] sm:$0xff]  ;;  %v76_v21 = vld [vmem:[#allocation5 + $0x128] sm:$0xff] }
  0x12   :  { %v78_v19 = vld [vmem:[#allocation5 + $0x138] sm:$0xff]  ;;  %v77_v20 = vld [vmem:[#allocation5 + $0x130] sm:$0xff]  ;;  %v75_v22 = vld [vmem:[#allocation5 + $0x120] sm:$0xff] }
  0x13   :  { %110 = vmatpush.msra.mxu1 %v58_v6  ;;  %129 = vmatpush.msra.mxu2 %v78_v19  ;;  %v74_v23 = vld [vmem:[#allocation5 + $0x118] sm:$0xff]  ;;  %v73_v24 = vld [vmem:[#allocation5 + $0x110] sm:$0xff]  ;;  %v72_v25 = vld [vmem:[#allocation5 + $0x108] sm:$0xff] }
  0x14   :  { %v71_v26 = vld [vmem:[#allocation5 + $0x100] sm:$0xff]  ;;  %v70_v27 = vld [vmem:[#allocation5 + $0xf8] sm:$0xff]  ;;  %v69_v28 = vld [vmem:[#allocation5 + $0xf0] sm:$0xff] }
  0x15   :  { %111 = vmatpush.msra.mxu1 %v57_v7  ;;  %130 = vmatpush.msra.mxu2 %v77_v20  ;;  %v68_v29 = vld [vmem:[#allocation5 + $0xe8] sm:$0xff]  ;;  %v67_v30 = vld [vmem:[#allocation5 + $0xe0] sm:$0xff]  ;;  %v66_v31 = vld [vmem:[#allocation5 + $0xd8] sm:$0xff] }
  0x16   :  { %v175_v32 = vld [vmem:[#allocation5 + $0x20] ss:$0 sm:$0xff]  ;;  %v65_v36 = vld [vmem:[#allocation5 + $0xd0] sm:$0xff]  ;;  %v64_v37 = vld [vmem:[#allocation5 + $0xc8] sm:$0xff] }
  0x17   :  { %112 = vmatpush.msra.mxu1 %v56_v8  ;;  %131 = vmatpush.msra.mxu2 %v76_v21  ;;  %v63_v38 = vld [vmem:[#allocation5 + $0xc0] sm:$0xff]  ;;  %v176_v39 = vld [vmem:[#allocation5 + $0xb0] ss:$0 sm:$0xff] }
  0x18   :  { %v177_v43 = vld [vmem:[#allocation5 + $0x140] ss:$0 sm:$0xff] }
  0x19   :  { %113 = vmatpush.msra.mxu1 %v55_v9  ;;  %132 = vmatpush.msra.mxu2 %v75_v22 }
  0x1b   :  { %114 = vmatpush.msra.mxu1 %v54_v10  ;;  %133 = vmatpush.msra.mxu2 %v74_v23 }
  0x1d   :  { %115 = vmatpush.msra.mxu1 %v53_v11  ;;  %134 = vmatpush.msra.mxu2 %v73_v24 }
  0x1f   :  { %116 = vmatpush.msra.mxu1 %v52_v12  ;;  %135 = vmatpush.msra.mxu2 %v72_v25 }
  0x21   :  { %117 = vmatpush.msra.mxu1 %v51_v13  ;;  %136 = vmatpush.msra.mxu2 %v71_v26 }
  0x23   :  { %118 = vmatpush.msra.mxu1 %v50_v14  ;;  %137 = vmatpush.msra.mxu2 %v70_v27 }
  0x25   :  { %119 = vmatpush.msra.mxu1 %v49_v15  ;;  %138 = vmatpush.msra.mxu2 %v69_v28 }
  0x27   :  { %120 = vmatpush.msra.mxu1 %v48_v16  ;;  %139 = vmatpush.msra.mxu2 %v68_v29 }
  0x29   :  { %121 = vmatpush.msra.mxu1 %v47_v17  ;;  %140 = vmatpush.msra.mxu2 %v67_v30 }
  0x2b   :  { %122 = vmatpush.msra.mxu1 %v46_v18  ;;  %141 = vmatpush.msra.mxu2 %v66_v31 }
  0x2d   :  { %142 = vmatpush.msra.mxu2 %v65_v36 }
  0x2f   :  { %143 = vmatpush.msra.mxu2 %v64_v37 }
  0x31   :  { %144 = vmatpush.msra.mxu2 %v63_v38 }
  0x8c   :  { %v102_v33 = vpop.f32.mrf.mxu0 }
  0x8d   :  { %v103_v34 = vadd.f32 %v175_v32, %v102_v33 }
  0x8f   :  { %v105_v35 = vmax.f32 %v103_v34, 0.0 }
  0x91   :  { %123 = vmatmul.f32.vlgmr.msra.gmra.mxu1 %v105_v35 }
 0x10e   :  { %v124_v40 = vpop.f32.mrf.mxu1 }
 0x10f   :  { %v125_v41 = vadd.f32 %v176_v39, %v124_v40 }
 0x111   :  { %v127_v42 = vmax.f32 %v125_v41, 0.0 }
 0x113   :  { %145 = vmatmul.f32.vlgmr.msra.gmra.mxu2 %v127_v42 }
 0x196   :  { %v146_v44 = vpop.f32.mrf.mxu2 }
 0x197   :  { %v147_v45 = vadd.f32 %v177_v43, %v146_v44 }
 0x199   :  { %150 = vst.msk [vmem:[#allocation7] sm:$0xff] %vm149_vm1, %v147_v45 }
 0x19a   :  { %161 = dma.vmem_to_hbm [thread:$0]  %s157_s1, 128, %s159_s23, [#allocation4]  }
 0x19b   :  { %254 = dma.done.wait [#allocation4], 128  }
 0x19c   :  { %255 = vsyncadd [#allocation4], 4294967168 }
 0x19d   :  { %166 = vsyncpa [#allocation3], 1 }
 0x19e   :  { %167 = vsyncpa [#allocation6], 1 }
 0x19f   :  { %168 = vsyncpa [#allocation4], 1 }

</bundles_post_ra>
